<compile_context>
chip_gen: v7x
topology: tpu7x:2x2x1
jax: 0.10.0
libtpu: 0.0.40
codegen_flags: <defaults>
</compile_context>

<pallas_src>
import functools

import jax
import jax.numpy as jnp
from jax import lax
from jax.experimental import pallas as pl
from jax.experimental.pallas import tpu as pltpu


def _matmul_bias_relu_kernel(x_ref, w_ref, b_ref, o_ref):
    # x_ref: (K, ts)      activation columns of one image tile (lane = spatial)
    # w_ref: (C_out, K)   conv weight with BN scale already folded in
    # b_ref: (C_out, 1)   folded BN bias
    # o_ref: (C_out, ts)
    y = jnp.dot(w_ref[...], x_ref[...], preferred_element_type=jnp.float32)
    y = y + b_ref[...]
    o_ref[...] = jnp.maximum(y, 0.0).astype(o_ref.dtype)


def _fused_conv_bn_relu(x3d, w2d, bias, *, ts_max=1024):
    """x3d: (N, K, HW); w2d: (C_out, K); bias: (C_out, 1) -> (N, C_out, HW) f32."""
    n, k_dim, hw = x3d.shape
    c_out = w2d.shape[0]

    # Lane (last) dim of each block must be a multiple of 128 or the full extent.
    # Large tiles amortize the ~0.35us per-grid-step overhead.
    if hw % 128 == 0:
        ts = min(hw, ts_max)
    else:
        ts = hw
    grid = (n, pl.cdiv(hw, ts))

    itm = jnp.dtype(x3d.dtype).itemsize
    vmem_est = (2 * k_dim * ts * itm      # double-buffered activation tile
                + 2 * c_out * ts * 4      # double-buffered output tile
                + k_dim * c_out * itm     # resident folded weight
                + c_out * 4               # resident bias
                + (2 << 20))              # slack
    vmem_limit = int(min(max(vmem_est, 16 << 20), 48 << 20))

    cost = pl.CostEstimate(
        flops=2 * n * k_dim * c_out * hw,
        transcendentals=0,
        bytes_accessed=itm * (n * k_dim * hw + k_dim * c_out) + 4 * n * c_out * hw,
    )

    return pl.pallas_call(
        _matmul_bias_relu_kernel,
        out_shape=jax.ShapeDtypeStruct((n, c_out, hw), jnp.float32),
        grid_spec=pltpu.PrefetchScalarGridSpec(
            num_scalar_prefetch=0,
            grid=grid,
            in_specs=[
                pl.BlockSpec((None, k_dim, ts), lambda b, j: (b, 0, j)),
                pl.BlockSpec((c_out, k_dim), lambda b, j: (0, 0)),
                pl.BlockSpec((c_out, 1), lambda b, j: (0, 0)),
            ],
            out_specs=pl.BlockSpec((None, c_out, ts), lambda b, j: (b, 0, j)),
        ),
        compiler_params=pltpu.CompilerParams(
            dimension_semantics=("parallel", "parallel"),
            vmem_limit_bytes=vmem_limit,
        ),
        cost_estimate=cost,
    )(x3d, w2d, bias)


def conv_module_forward(x, weight, gamma, beta, running_mean, running_var,
                        *, stride=1, padding=0, eps=1e-3, ts_max=1024):
    """ConvModule.forward in eval mode: ReLU(BN(Conv2d(x))).

    x: (N, C_in, H, W) NCHW; weight: (C_out, C_in, kh, kw) OIHW, groups=1, no bias.
    """
    n, c_in, h, w = x.shape
    c_out, w_cin, kh, kw = weight.shape
    if w_cin != c_in:
        raise NotImplementedError("grouped conv (g > 1) not supported")

    if kh == 1 and kw == 1 and stride == 1 and padding == 0:
        # 1x1 conv (module default): NCHW already gives the lane-dense (H*W)
        # layout — no patch extraction, no transposes.
        h_out, w_out = h, w
        k_dim = c_in
        x3d = x.reshape(n, c_in, h * w)
    else:
        # im2col glue; NCHW patches are already (K, H_out*W_out) per image,
        # feature dim ordered (C_in, kh, kw) to match OIHW weight flattening.
        patches = lax.conv_general_dilated_patches(
            x,
            filter_shape=(kh, kw),
            window_strides=(stride, stride),
            padding=((padding, padding), (padding, padding)),
            dimension_numbers=("NCHW", "OIHW", "NCHW"),
        )
        _, k_dim, h_out, w_out = patches.shape
        x3d = patches.reshape(n, k_dim, h_out * w_out)

    # Fold BN (inference, running stats) into weight + bias: y = (W*s) x + b.
    scale = gamma * lax.rsqrt(running_var + eps)              # (C_out,)
    w2d = weight.reshape(c_out, k_dim) * scale[:, None]       # (C_out, K)
    bias = (beta - running_mean * scale).reshape(c_out, 1)    # (C_out, 1)

    out3d = _fused_conv_bn_relu(
        x3d.astype(jnp.float32),
        w2d.astype(jnp.float32),
        bias.astype(jnp.float32),
        ts_max=ts_max,
    )
    return out3d.reshape(n, c_out, h_out, w_out)


def _reference(x, weight, gamma, beta, running_mean, running_var,
               *, stride=1, padding=0, eps=1e-3):
    y = lax.conv_general_dilated(
        x, weight, window_strides=(stride, stride),
        padding=((padding, padding), (padding, padding)),
        dimension_numbers=("NCHW", "OIHW", "NCHW"),
        precision=lax.Precision.HIGHEST)
    s = (gamma / jnp.sqrt(running_var + eps)).reshape(1, -1, 1, 1)
    b = (beta - running_mean * gamma / jnp.sqrt(running_var + eps)).reshape(1, -1, 1, 1)
    return jnp.maximum(y * s + b, 0.0)


if __name__ == "__main__":
    key = jax.random.PRNGKey(0)
    k_x, k_w1, k_w3, k_g, k_b, k_m, k_v = jax.random.split(key, 7)

    n, c1, c2, h, w = 2, 4, 8, 16, 16

    x = jax.random.normal(k_x, (n, c1, h, w), dtype=jnp.float32)
    gamma = 1.0 + 0.1 * jax.random.normal(k_g, (c2,), dtype=jnp.float32)
    beta = 0.1 * jax.random.normal(k_b, (c2,), dtype=jnp.float32)
    running_mean = 0.1 * jax.random.normal(k_m, (c2,), dtype=jnp.float32)
    running_var = jnp.abs(1.0 + 0.1 * jax.random.normal(k_v, (c2,), dtype=jnp.float32))

    # Case 1: module defaults — ConvModule(c1, c2, k=1, s=1, p=0, g=1, act=True).
    w1 = 0.1 * jax.random.normal(k_w1, (c2, c1, 1, 1), dtype=jnp.float32)
    fwd1 = jax.jit(functools.partial(conv_module_forward, stride=1, padding=0))
    out1 = jax.block_until_ready(fwd1(x, w1, gamma, beta, running_mean, running_var))
    ref1 = _reference(x, w1, gamma, beta, running_mean, running_var, stride=1, padding=0)
    assert out1.shape == (n, c2, h, w)
    assert jnp.allclose(out1, ref1, atol=1e-4, rtol=1e-4)

    # Case 2: general path (k=3, s=1, p=1) — same fused kernel via im2col.
    w3 = 0.1 * jax.random.normal(k_w3, (c2, c1, 3, 3), dtype=jnp.float32)
    fwd3 = jax.jit(functools.partial(conv_module_forward, stride=1, padding=1))
    out3 = jax.block_until_ready(fwd3(x, w3, gamma, beta, running_mean, running_var))
    ref3 = _reference(x, w3, gamma, beta, running_mean, running_var, stride=1, padding=1)
    assert out3.shape == (n, c2, h, w)
    assert jnp.allclose(out3, ref3, atol=1e-3, rtol=1e-3)

    print("KERNEL_OK")
</pallas_src>

<mosaic_0001>
module attributes {stable_mosaic.version = 11 : i64} {
  func.func @_matmul_bias_relu_kernel(%arg0: i32, %arg1: i32, %arg2: memref<1x4x256xf32, #tpu.memory_space<vmem>>, %arg3: memref<8x4xf32, #tpu.memory_space<vmem>>, %arg4: memref<8x1xf32, #tpu.memory_space<vmem>>, %arg5: memref<1x8x256xf32, #tpu.memory_space<vmem>>) attributes {dimension_semantics = [#tpu.dimension_semantics<parallel>, #tpu.dimension_semantics<parallel>], iteration_bounds = array<i64: 2, 1>, scalar_prefetch = 0 : i64, scratch_operands = 0 : i64, tpu.core_type = #tpu.core_type<tc>, window_params = [{transform_indices = @transform_0, window_bounds = array<i64: 1, 4, 256>}, {pipeline_mode = #tpu.pipeline_mode<synchronous>, transform_indices = @transform_1, window_bounds = array<i64: 8, 4>}, {pipeline_mode = #tpu.pipeline_mode<synchronous>, transform_indices = @transform_2, window_bounds = array<i64: 8, 1>}, {transform_indices = @transform_3, window_bounds = array<i64: 1, 8, 256>}]} {
    %c0 = arith.constant 0 : index
    %c0_0 = arith.constant 0 : index
    %0 = vector.load %arg3[%c0, %c0_0] : memref<8x4xf32, #tpu.memory_space<vmem>>, vector<8x4xf32>
    %c0_1 = arith.constant 0 : index
    %c0_2 = arith.constant 0 : index
    %c0_3 = arith.constant 0 : index
    %1 = vector.load %arg2[%c0_1, %c0_2, %c0_3] : memref<1x4x256xf32, #tpu.memory_space<vmem>>, vector<1x4x256xf32>
    %2 = vector.shape_cast %1 : vector<1x4x256xf32> to vector<4x256xf32>
    %cst = arith.constant dense<0.000000e+00> : vector<8x256xf32>
    %3 = tpu.matmul %0, %2, %cst {dimension_numbers = #tpu.dot_dimension_numbers<[1], [0], [0], [1], [0, 0, 1, 1], [], []>} : vector<8x4xf32>, vector<4x256xf32>, vector<8x256xf32> -> vector<8x256xf32>
    %c0_4 = arith.constant 0 : index
    %c0_5 = arith.constant 0 : index
    %4 = vector.load %arg4[%c0_4, %c0_5] : memref<8x1xf32, #tpu.memory_space<vmem>>, vector<8x1xf32>
    %5 = vector.broadcast %4 : vector<8x1xf32> to vector<8x256xf32>
    %6 = arith.addf %3, %5 : vector<8x256xf32>
    %cst_6 = arith.constant 0.000000e+00 : f32
    %7 = vector.broadcast %cst_6 : f32 to vector<8x256xf32>
    %8 = arith.maximumf %6, %7 : vector<8x256xf32>
    %c0_7 = arith.constant 0 : index
    %c0_8 = arith.constant 0 : index
    %c0_9 = arith.constant 0 : index
    %9 = vector.load %arg5[%c0_7, %c0_8, %c0_9] : memref<1x8x256xf32, #tpu.memory_space<vmem>>, vector<1x8x256xf32>
    %10 = vector.shape_cast %9 : vector<1x8x256xf32> to vector<8x256xf32>
    %11 = vector.shape_cast %8 : vector<8x256xf32> to vector<1x8x256xf32>
    tpu.vector_store %arg5[%c0_7, %c0_8, %c0_9], %11 {strides = array<i32>} : memref<1x8x256xf32, #tpu.memory_space<vmem>>, vector<1x8x256xf32>,
    return
  }
  func.func @transform_0(%arg0: i32, %arg1: i32) -> (i32, i32, i32) {
    %c0_i32 = arith.constant 0 : i32
    %c0_i32_0 = arith.constant 0 : i32
    return %arg0, %c0_i32, %arg1 : i32, i32, i32
  }
  func.func @transform_1(%arg0: i32, %arg1: i32) -> (i32, i32) {
    %c0_i32 = arith.constant 0 : i32
    %c0_i32_0 = arith.constant 0 : i32
    %c0_i32_1 = arith.constant 0 : i32
    return %c0_i32, %c0_i32_0 : i32, i32
  }
  func.func @transform_2(%arg0: i32, %arg1: i32) -> (i32, i32) {
    %c0_i32 = arith.constant 0 : i32
    %c0_i32_0 = arith.constant 0 : i32
    %c0_i32_1 = arith.constant 0 : i32
    return %c0_i32, %c0_i32_0 : i32, i32
  }
  func.func @transform_3(%arg0: i32, %arg1: i32) -> (i32, i32, i32) {
    %c0_i32 = arith.constant 0 : i32
    %c0_i32_0 = arith.constant 0 : i32
    return %arg0, %c0_i32, %arg1 : i32, i32, i32
  }
}

</mosaic_0001>

<bundles_post_ra>
// kernel: conv_module_forward.1
= control target key start
LH: loop header
LB: loop body
LE: loop exit
PB: predicated region body
PF: predicated region fallthrough
CT: control target
= control target key end

     0   :  { %s481_s12 = smov 0   ;;  %s483_s13 = smov 0   ;;  %s520_s0 = inlined_call_operand.vmem [shape: f32[2,4,256], index: 0, kind: input, shape index: {}]   ;;  %s521_s1 = inlined_call_operand.vmem [shape: f32[8,4], index: 1, kind: input, shape index: {}]   ;;  %s522_s2 = inlined_call_operand.vmem [shape: f32[8,1], index: 2, kind: input, shape index: {}]   ;;  %s523_s3 = inlined_call_operand.vmem [shape: f32[2,8,256], index: 3, kind: output, shape index: {}]  }
   0x1   :  { %s485_s14 = smov 0  }
   0x2 LB: > { %s25_s15 = sadd.s32 1, %s453_s13  ;;  %p395_p0 = scmp.ge.s32.totalorder %s457_s14, 1  ;;  %s457_s14 = sphi %s485_s14, %s13_s14   ;;  %s453_s13 = sphi %s483_s13, %s525_s13   ;;  %s449_s12 = sphi %s481_s12, %s524_s12  }
   0x3   : > { %p27_p1 = scmp.ge.s32.totalorder %s25_s15, 2  ;;  %p158_p2 = scmp.lt.s32.totalorder %s457_s14, 3 }
   0x5   : > { %s527_s15 = smov (%p27_p1, %s25_s15), 0  ;;  %p159_p3 = pnand %p395_p0, %p158_p2 }
   0x6   : > { %p191_p4 = scmp.lt.s32.totalorder (!%p159_p3), %s449_s12, 1  ;;  %v459_v0 = vmov (!%p159_p3), 0.0   ;;  %v460_v1 = vmov (!%p159_p3), 0   ;;  %v212_v2 = vld [vmem:[%s522_s2] sm:$0xff] (!%p159_p3)  ;;  %vm224_vm0 = vcmask (!%p159_p3), 1043456   ;;  %vm220_vm1 = vcmask (!%p159_p3), 31744  }
   0x7   : > { %162 = sbr.rel (%p159_p3) target bundleno = 240 (0xf0), region = 32  ;;  %293 = vmatprep.mubr.f32.mxu0 (!%p159_p3), %v459_v0  ;;  %433 = vset.pattern.permute.xlu0 (!%p159_p3), %v460_v1  ;;  %v210_v5 = vld [vmem:[%s521_s1] sm:$0xff] (!%p159_p3) }
   0x8   : > { %215 = vperm.xlu0 (!%p159_p3), %433, %v212_v2  }
   0xe   : > { %s529_s12 = smov (!%p191_p4, %s449_s12), 1 }
   0xf   : > { %s405_s18 = sshll.u32 %s529_s12, 3  ;;  %s406_s24 = sshll.u32 %s529_s12, 4 }
  0x10   : > { %s198_s21 = scalar_lea.vmem %s520_s0, %s405_s18  ;;  %s208_s27 = scalar_lea.vmem %s523_s3, %s406_s24 }
  0x11   : > { %v211_v3 = vld [vmem:[%s198_s21] sm:$0xff] }
  0x12   : > { %v219_v4 = vcombine.high %v211_v3, %v211_v3 }
  0x14   : > { %400 = vmatprep.subr.msk.mxu0 %vm224_vm0, %v219_v4 }
  0x15   : > { %401 = vmatpush1.msk.msra.mxu0 %vm224_vm0, %v211_v3 }
  0x16   : > { %402 = vmatmul.mubr.msk.f32.vlgmr.msra.gmra.mrb[0].mxu0 %vm220_vm1, %v210_v5 }
  0x87   : > { %v216_v6 = vpop.permute.xlu0 %215 }
  0xe9   : > { %v295_v7 = vpop.f32.mrb[0].mxu0 }
  0xea   : > { %v296_v8 = vadd.f32 %v295_v7, %v216_v6  ;;  %v297_v9 = vpop.f32.mrb[1].mxu0 }
  0xeb   : > { %v298_v10 = vadd.f32 %v297_v9, %v216_v6 }
  0xec   : > { %v300_v11 = vmax.f32 %v296_v8, 0.0 }
  0xed   : > { %v301_v12 = vmax.f32 %v298_v10, 0.0 }
  0xee   : > { %302 = vst [vmem:[%s208_s27] sm:$0xff] %v300_v11 }
  0xef   : > { %303 = vst [vmem:[%s208_s27 + $0x8] sm:$0xff] %v301_v12 }
  0xf0 PF: > { %s13_s14 = sadd.s32 1, %s457_s14   ;;  %s524_s12 = smov %s453_s13 }
  0xf1   : > { %p10_p5 = scmp.ge.s32.totalorder %s13_s14, 4   ;;  %s525_s13 = smov %s527_s15 }
  0xf3   :  { %12 = sbr.rel (!%p10_p5) target bundleno = 2 (0x2), region = 62 }

</bundles_post_ra>
